<compile_context>
chip_gen: v7x
topology: tpu7x:2x2x1
jax: 0.10.0
libtpu: 0.0.40
codegen_flags: <defaults>
</compile_context>

<pallas_src>
import jax
import jax.numpy as jnp
from jax.experimental import pallas as pl
from jax.experimental.pallas import tpu as pltpu


# Per-pipeline-stage VMEM byte budget (sum of input tiles + output tile).
# Double buffering doubles this, so ~24 MiB peak -> fits v7x's 64 MiB VMEM/TC
# and v5e/v6e comfortably.
_PER_BUFFER_BUDGET = 12 * 1024 * 1024
_VMEM_LIMIT_BYTES = 48 * 1024 * 1024
_ROW_PACK = 32  # row-tile multiple safe for f32(8)/bf16(16)/int8(32) packing


def _make_concat_kernel(dims, bcast_flags, out_dtype):
    """Kernel that copies each input ref into its column range of out_ref."""
    offsets = [0]
    for d in dims:
        offsets.append(offsets[-1] + d)
    total = offsets[-1]

    def kernel(*refs):
        in_refs = refs[:-1]
        out_ref = refs[-1]
        tb = out_ref.shape[0]
        for r, off, d, bc in zip(in_refs, offsets[:-1], dims, bcast_flags):
            # dtype promotion in-kernel (no-op if dtypes already match)
            v = r[...].astype(out_dtype)
            if bc:
                # single source row replicated over the whole output tile
                v = jnp.broadcast_to(v, (tb, d))
            out_ref[:, off:off + d] = v

    return kernel, total


def _choose_tile_rows(batch, row_bytes):
    """Largest row-tile that keeps one pipeline stage under the VMEM budget."""
    if batch * row_bytes <= _PER_BUFFER_BUDGET:
        return batch  # single block covers everything (tiny-input fast path)
    tb = max(1, _PER_BUFFER_BUDGET // max(row_bytes, 1))
    tb = max(_ROW_PACK, (tb // _ROW_PACK) * _ROW_PACK)
    # TODO(synk): if a single row ever exceeds the budget, column tiling of the
    # feature dim would be needed; not implemented (row tiling only).
    return min(tb, batch)


def concat_last_dim_pallas(arrays, bcast_flags, out_dtype, tile_rows=None):
    """Concatenate 2D arrays along dim -1.

    arrays[i] is (B, D_i) when bcast_flags[i] is False, or (1, D_i) when True
    (fully-broadcast input: read once via a constant index_map and replicated
    inside the kernel, never materialized in HBM).
    """
    dims = [int(a.shape[1]) for a in arrays]
    batch = max(int(a.shape[0]) for a in arrays)
    kernel, total = _make_concat_kernel(dims, bcast_flags, out_dtype)

    itemsize = jnp.dtype(out_dtype).itemsize
    row_bytes = 2 * total * itemsize  # ~ input rows + output row per batch row
    tb = tile_rows if tile_rows is not None else _choose_tile_rows(batch, row_bytes)
    grid = (pl.cdiv(batch, tb),)

    in_specs = []
    for a, bc in zip(arrays, bcast_flags):
        d = int(a.shape[1])
        if bc:
            in_specs.append(pl.BlockSpec((1, d), lambda i: (0, 0)))
        else:
            in_specs.append(pl.BlockSpec((tb, d), lambda i: (i, 0)))

    return pl.pallas_call(
        kernel,
        out_shape=jax.ShapeDtypeStruct((batch, total), out_dtype),
        grid=grid,
        in_specs=in_specs,
        out_specs=pl.BlockSpec((tb, total), lambda i: (i, 0)),
        compiler_params=pltpu.CompilerParams(
            dimension_semantics=("parallel",),   # 2x on v7x (2 TCs); neutral elsewhere
            vmem_limit_bytes=_VMEM_LIMIT_BYTES,
        ),
    )(*arrays)


class ConcatModule:
    """JAX/Pallas port of the torch ConcatModule."""

    def __init__(self, allow_broadcast: bool = False):
        self.allow_broadcast = allow_broadcast

    def __call__(self, *input_args):
        # mirror torch: unwrap single positional arg
        if len(input_args) == 1:
            input_args = input_args[0]
        # single tensor -> identity (torch.is_tensor equivalent)
        if isinstance(input_args, jnp.ndarray):
            return input_args

        tensors = [jnp.asarray(t) for t in input_args]

        if self.allow_broadcast:
            lead = jnp.broadcast_shapes(*[t.shape[:-1] for t in tensors])
        else:
            lead = tensors[0].shape[:-1]

        batch = 1
        for s in lead:
            batch *= int(s)

        # NOTE: torch.cat requires identical dtypes; we are lenient and promote.
        out_dtype = jnp.result_type(*[t.dtype for t in tensors])

        flat, bcast = [], []
        for t in tensors:
            tl = tuple(t.shape[:-1])
            d = int(t.shape[-1])
            if tl == tuple(lead):
                flat.append(t.reshape(batch, d))
                bcast.append(False)
            elif all(int(s) == 1 for s in tl):
                # fully-broadcast leading dims: keep the single source row,
                # replicate inside the kernel (no HBM materialization).
                flat.append(t.reshape(1, d))
                bcast.append(True)
            else:
                # partial broadcast (mixed 1 / non-1 leading dims): correctness
                # fallback that materializes the expanded tensor.
                flat.append(
                    jnp.broadcast_to(t, tuple(lead) + (d,)).reshape(batch, d))
                bcast.append(False)

        out = concat_last_dim_pallas(flat, bcast, out_dtype)
        return out.reshape(tuple(lead) + (out.shape[-1],))


if __name__ == "__main__":
    key = jax.random.PRNGKey(0)
    k1, k2, k3, k4, k5 = jax.random.split(key, 5)

    x = jax.random.normal(k1, (2, 8, 32), dtype=jnp.float32)
    y = jax.random.normal(k2, (2, 8, 64), dtype=jnp.float32)
    z = jax.random.normal(k3, (2, 8, 32), dtype=jnp.float32)

    mod = ConcatModule(allow_broadcast=False)
    out = jax.block_until_ready(mod(x, y, z))
    ref = jnp.concatenate([x, y, z], axis=-1)
    assert out.shape == (2, 8, 128), out.shape
    assert jnp.array_equal(out, ref), "concat mismatch"

    # explicitly exercise the tiled / gridded path with a small forced tile
    flat = [x.reshape(16, 32), y.reshape(16, 64), z.reshape(16, 32)]
    out_t = jax.block_until_ready(
        concat_last_dim_pallas(flat, [False, False, False], jnp.float32,
                               tile_rows=8))
    assert jnp.array_equal(out_t, ref.reshape(16, 128)), "tiled concat mismatch"

    # fully-broadcast input -> constant index_map path (no materialization)
    mod_b = ConcatModule(allow_broadcast=True)
    a = jax.random.normal(k4, (1, 1, 32), dtype=jnp.float32)
    out_b = jax.block_until_ready(mod_b(a, y))
    ref_b = jnp.concatenate([jnp.broadcast_to(a, (2, 8, 32)), y], axis=-1)
    assert out_b.shape == (2, 8, 96), out_b.shape
    assert jnp.array_equal(out_b, ref_b), "broadcast concat mismatch"

    # partial broadcast fallback path
    c = jax.random.normal(k5, (1, 8, 32), dtype=jnp.float32)
    out_p = jax.block_until_ready(mod_b(c, y))
    ref_p = jnp.concatenate([jnp.broadcast_to(c, (2, 8, 32)), y], axis=-1)
    assert jnp.array_equal(out_p, ref_p), "partial-broadcast concat mismatch"

    # mixed dtype: promotion happens inside the kernel
    w = x.astype(jnp.bfloat16)
    out_m = jax.block_until_ready(mod(w, y))
    ref_m = jnp.concatenate([w.astype(jnp.float32), y], axis=-1)
    assert out_m.dtype == jnp.float32
    assert jnp.array_equal(out_m, ref_m), "mixed-dtype concat mismatch"

    # single-tensor identity path
    assert mod(x) is x

    print("KERNEL_OK")
</pallas_src>

<mosaic_0001>
module attributes {stable_mosaic.version = 11 : i64} {
  func.func @kernel(%arg0: i32, %arg1: memref<16x32xf32, #tpu.memory_space<vmem>>, %arg2: memref<16x64xf32, #tpu.memory_space<vmem>>, %arg3: memref<16x32xf32, #tpu.memory_space<vmem>>, %arg4: memref<16x128xf32, #tpu.memory_space<vmem>>) attributes {dimension_semantics = [#tpu.dimension_semantics<parallel>], iteration_bounds = array<i64: 1>, scalar_prefetch = 0 : i64, scratch_operands = 0 : i64, tpu.core_type = #tpu.core_type<tc>, window_params = [{transform_indices = @transform_0, window_bounds = array<i64: 16, 32>}, {transform_indices = @transform_1, window_bounds = array<i64: 16, 64>}, {transform_indices = @transform_2, window_bounds = array<i64: 16, 32>}, {transform_indices = @transform_3, window_bounds = array<i64: 16, 128>}]} {
    %c0 = arith.constant 0 : index
    %c0_0 = arith.constant 0 : index
    %0 = vector.load %arg1[%c0, %c0_0] : memref<16x32xf32, #tpu.memory_space<vmem>>, vector<16x32xf32>
    %c0_1 = arith.constant 0 : index
    %c0_2 = arith.constant 0 : index
    %1 = vector.load %arg4[%c0_1, %c0_2] : memref<16x128xf32, #tpu.memory_space<vmem>>, vector<16x32xf32>
    tpu.vector_store %arg4[%c0_1, %c0_2], %0 {strides = array<i32>} : memref<16x128xf32, #tpu.memory_space<vmem>>, vector<16x32xf32>,
    %c0_3 = arith.constant 0 : index
    %c0_4 = arith.constant 0 : index
    %2 = vector.load %arg2[%c0_3, %c0_4] : memref<16x64xf32, #tpu.memory_space<vmem>>, vector<16x64xf32>
    %c0_5 = arith.constant 0 : index
    %c32 = arith.constant 32 : index
    %3 = vector.load %arg4[%c0_5, %c32] : memref<16x128xf32, #tpu.memory_space<vmem>>, vector<16x64xf32>
    tpu.vector_store %arg4[%c0_5, %c32], %2 {strides = array<i32>} : memref<16x128xf32, #tpu.memory_space<vmem>>, vector<16x64xf32>,
    %c0_6 = arith.constant 0 : index
    %c0_7 = arith.constant 0 : index
    %4 = vector.load %arg3[%c0_6, %c0_7] : memref<16x32xf32, #tpu.memory_space<vmem>>, vector<16x32xf32>
    %c0_8 = arith.constant 0 : index
    %c96 = arith.constant 96 : index
    %5 = vector.load %arg4[%c0_8, %c96] : memref<16x128xf32, #tpu.memory_space<vmem>>, vector<16x32xf32>
    tpu.vector_store %arg4[%c0_8, %c96], %4 {strides = array<i32>} : memref<16x128xf32, #tpu.memory_space<vmem>>, vector<16x32xf32>,
    return
  }
  func.func @transform_0(%arg0: i32) -> (i32, i32) {
    %c0_i32 = arith.constant 0 : i32
    %c0_i32_0 = arith.constant 0 : i32
    return %arg0, %c0_i32 : i32, i32
  }
  func.func @transform_1(%arg0: i32) -> (i32, i32) {
    %c0_i32 = arith.constant 0 : i32
    %c0_i32_0 = arith.constant 0 : i32
    return %arg0, %c0_i32 : i32, i32
  }
  func.func @transform_2(%arg0: i32) -> (i32, i32) {
    %c0_i32 = arith.constant 0 : i32
    %c0_i32_0 = arith.constant 0 : i32
    return %arg0, %c0_i32 : i32, i32
  }
  func.func @transform_3(%arg0: i32) -> (i32, i32) {
    %c0_i32 = arith.constant 0 : i32
    %c0_i32_0 = arith.constant 0 : i32
    return %arg0, %c0_i32 : i32, i32
  }
}

</mosaic_0001>

<bundles_post_ra>
// kernel: tpu_custom_call.1
= control target key start
LH: loop header
LB: loop body
LE: loop exit
PB: predicated region body
PF: predicated region fallthrough
CT: control target
= control target key end

     0   :  { %8 = vsyncpa [#allocation3], 0  ;;  %s302_s0 = inlined_call_operand.hbm [shape: f32[16,32], index: 0, kind: input, shape index: {}]   ;;  %s303_s1 = inlined_call_operand.hbm [shape: f32[16,64], index: 1, kind: input, shape index: {}]   ;;  %s304_s2 = inlined_call_operand.hbm [shape: f32[16,32], index: 2, kind: input, shape index: {}]   ;;  %s305_s3 = inlined_call_operand.hbm [shape: f32[16,128], index: 3, kind: output, shape index: {}]  }
   0x1   :  { %9 = vsyncpa [#allocation6], 0 }
   0x2   :  { %10 = vsyncpa [#allocation4], 0  ;;  %s207_s12 = smov [#allocation5]   ;;  %s208_s14 = smov [#allocation2]  }
   0x3   :  { %s28_s13 = sshll.u32 %s207_s12, 4  ;;  %s16_s15 = sshll.u32 %s208_s14, 4  ;;  %s29_s13 = int_to_ptr.vmem [resolvable:$true] %s28_s13  ;;  %s235_s15 = int_to_ptr.vmem [resolvable:$true] %s16_s15 }
   0x4   :  { %s113_s18 = scalar_lea.hbm %s303_s1, 256 }
   0x5   :  { %p114_p0 = scmp.ne.s32.totalorder %s303_s1, %s113_s18  ;;  %p117_p1 = scmp.lt.u32.totalorder %s113_s18, %s303_s1 }
   0x7   :  { %p119_p2 = pnand %p117_p1, %p114_p0 }
   0x9   :  { %122 = shalt.err (!%p119_p2)
}
   0xa   :  { %s123_s23 = scalar_lea.vmem %s29_s13, 256  ;;  %p128_p4 = scmp.lt.s32.totalorder %s29_s13, %s29_s13 }
   0xb   :  { %p124_p3 = scmp.ne.s32.totalorder %s29_s13, %s123_s23  ;;  %p129_p5 = scmp.lt.s32.totalorder %s123_s23, %s123_s23 }
   0xd   :  { %p130_p6 = por %p129_p5, %p128_p4 }
   0xf   :  { %p131_p7 = pnand %p130_p6, %p124_p3 }
  0x11   :  { %134 = shalt.err (!%p131_p7)
}
  0x12   :  { %s209_s24 = smov 128   ;;  %s210_s25 = smov 8  }
  0x13   :  { %34 = dma.hbm_to_vmem [thread:$0]  %s303_s1, 256, %s29_s13, [#allocation6], %s209_s24, %s209_s24, %s210_s25  }
  0x14   :  { %s135_s30 = scalar_lea.hbm %s302_s0, 256 }
  0x15   :  { %p136_p8 = scmp.ne.s32.totalorder %s302_s0, %s135_s30  ;;  %p139_p9 = scmp.lt.u32.totalorder %s135_s30, %s302_s0 }
  0x17   :  { %p141_p10 = pnand %p139_p9, %p136_p8 }
  0x19   :  { %144 = shalt.err (!%p141_p10)
}
  0x1a   :  { %s145_s8 = scalar_lea.vmem %s235_s15, 256  ;;  %p150_p12 = scmp.lt.s32.totalorder %s235_s15, %s235_s15 }
  0x1b   :  { %p146_p11 = scmp.ne.s32.totalorder %s235_s15, %s145_s8  ;;  %p151_p13 = scmp.lt.s32.totalorder %s145_s8, %s145_s8 }
  0x1d   :  { %p152_p0 = por %p151_p13, %p150_p12 }
  0x1f   :  { %p153_p1 = pnand %p152_p0, %p146_p11 }
  0x21   :  { %156 = shalt.err (!%p153_p1)
}
  0x22   :  { %22 = dma.hbm_to_vmem [thread:$0]  %s302_s0, 256, %s235_s15, [#allocation3], %s209_s24, %s209_s24, %s210_s25  }
  0x23   :  { %s211_s10 = smov [#allocation7]   ;;  %s157_s14 = scalar_lea.hbm %s304_s2, 256 }
  0x24   :  { %s40_s11 = sshll.u32 %s211_s10, 4  ;;  %p158_p2 = scmp.ne.s32.totalorder %s304_s2, %s157_s14  ;;  %s41_s11 = int_to_ptr.vmem [resolvable:$true] %s40_s11 }
  0x25   :  { %p161_p3 = scmp.lt.u32.totalorder %s157_s14, %s304_s2 }
  0x27   :  { %p163_p4 = pnand %p161_p3, %p158_p2 }
  0x29   :  { %166 = shalt.err (!%p163_p4)
}
  0x2a   :  { %s167_s20 = scalar_lea.vmem %s41_s11, 256  ;;  %p172_p6 = scmp.lt.s32.totalorder %s41_s11, %s41_s11 }
  0x2b   :  { %p168_p5 = scmp.ne.s32.totalorder %s41_s11, %s167_s20  ;;  %p173_p7 = scmp.lt.s32.totalorder %s167_s20, %s167_s20 }
  0x2d   :  { %p174_p8 = por %p173_p7, %p172_p6 }
  0x2f   :  { %p175_p9 = pnand %p174_p8, %p168_p5 }
  0x31   :  { %178 = shalt.err (!%p175_p9)
}
  0x32   :  { %46 = dma.hbm_to_vmem [thread:$0]  %s304_s2, 256, %s41_s11, [#allocation6], %s209_s24, %s209_s24, %s210_s25  }
  0x33   :  { %201 = dma.done.wait [#allocation3], 256  }
  0x34   :  { %202 = vsyncadd [#allocation3], 4294967040 }
  0x35   :  { %203 = dma.done.wait [#allocation6], 512  }
  0x36   :  { %204 = vsyncadd [#allocation6], 4294966784  ;;  %vm58_vm0 = vcmask 261120   ;;  %v61_v0 = vld [vmem:[#allocation5] sm:$0xff]  ;;  %v74_v1 = vld [vmem:[#allocation7] sm:$0xff]  ;;  %s212_s21 = smov 32  }
  0x37   :  { %65 = vrot.lane.b32.xlu0 %v61_v0, %s212_s21  ;;  %s213_s22 = smov 96   ;;  %v56_v2 = vld [vmem:[#allocation2] sm:$0xff]  ;;  %v57_v3 = vld [vmem:[#allocation2 + $0x8] sm:$0xff]  ;;  %v62_v4 = vld [vmem:[#allocation5 + $0x8] sm:$0xff]  ;;  %vm71_vm1 = vcmask 785664   ;;  %vm84_vm2 = vcmask 1048320  }
  0x38   :  { %78 = vrot.lane.b32.xlu1 %v74_v1, %s213_s22  ;;  %v75_v5 = vld [vmem:[#allocation7 + $0x8] sm:$0xff]  ;;  %59 = vst.msk [vmem:[#allocation8] sm:$0xff] %vm58_vm0, %v56_v2  ;;  %60 = vst.msk [vmem:[#allocation8 + $0x8] sm:$0xff] %vm58_vm0, %v57_v3  ;;  %s214_s2 = smov [#allocation8]  }
  0x39   :  { %s92_s23 = sshll.u32 %s214_s2, 4  ;;  %s93_s23 = int_to_ptr.vmem [resolvable:$true] %s92_s23 }
  0x3a   :  { %s179_s26 = scalar_lea.vmem %s93_s23, 256  ;;  %p184_p11 = scmp.lt.s32.totalorder %s93_s23, %s93_s23 }
  0x3b   :  { %67 = vrot.lane.b32.xlu0 %v62_v4, %s212_s21  ;;  %p180_p10 = scmp.ne.s32.totalorder %s93_s23, %s179_s26  ;;  %p185_p12 = scmp.lt.s32.totalorder %s179_s26, %s179_s26 }
  0x3c   :  { %80 = vrot.lane.b32.xlu1 %v75_v5, %s213_s22 }
  0x3d   :  { %p186_p13 = por %p185_p12, %p184_p11 }
  0x3f   :  { %p187_p0 = pnand %p186_p13, %p180_p10 }
  0xa9   :  { %v66_v6 = vpop.permute.xlu0 %65 }
  0xaa   :  { %v79_v7 = vpop.permute.xlu1 %78  ;;  %72 = vst.msk [vmem:[#allocation8] sm:$0xff] %vm71_vm1, %v66_v6 }
  0xab   :  { %85 = vst.msk [vmem:[#allocation8] sm:$0xff] %vm84_vm2, %v79_v7 }
  0xad   :  { %v68_v8 = vpop.permute.xlu0 %67 }
  0xae   :  { %v81_v9 = vpop.permute.xlu1 %80  ;;  %73 = vst.msk [vmem:[#allocation8 + $0x8] sm:$0xff] %vm71_vm1, %v68_v8 }
  0xaf   :  { %86 = vst.msk [vmem:[#allocation8 + $0x8] sm:$0xff] %vm84_vm2, %v81_v9 }
  0xb0   :  { %190 = shalt.err (!%p187_p0)
}
  0xb1   :  { %s191_s29 = scalar_lea.hbm %s305_s3, 256 }
  0xb2   :  { %p192_p1 = scmp.ne.s32.totalorder %s305_s3, %s191_s29  ;;  %p195_p2 = scmp.lt.u32.totalorder %s191_s29, %s305_s3 }
  0xb4   :  { %p197_p3 = pnand %p195_p2, %p192_p1 }
  0xb6   :  { %200 = shalt.err (!%p197_p3)
}
  0xb7   :  { %98 = dma.vmem_to_hbm [thread:$0]  %s93_s23, 256, %s305_s3, [#allocation4], %s209_s24, %s209_s24, %s210_s25  }
  0xb8   :  { %205 = dma.done.wait [#allocation4], 256  }
  0xb9   :  { %206 = vsyncadd [#allocation4], 4294967040 }
  0xba   :  { %102 = vsyncpa [#allocation3], 1 }
  0xbb   :  { %103 = vsyncpa [#allocation6], 1 }
  0xbc   :  { %104 = vsyncpa [#allocation4], 1 }

</bundles_post_ra>
